<compile_context>
chip_gen: v7x
topology: tpu7x:2x2x1
jax: 0.10.0
libtpu: 0.0.40
codegen_flags: <defaults>
</compile_context>

<pallas_src>
import jax
import jax.numpy as jnp
from jax import lax
from jax.experimental import pallas as pl
from jax.experimental.pallas import tpu as pltpu

EPS = 1e-5        # torch.nn.InstanceNorm2d default eps
NEG_SLOPE = 0.2   # LeakyReLU negative slope


def _block_kernel(p_ref, w_ref, o_ref):
    # p_ref: (1, P, CK, HWq)  per-parity im2col patches, pre-transposed (CK on sublanes, HWq on lanes)
    # w_ref: (P, Cout, CK)    per-parity weight matrices
    # o_ref: (1, Cout, P*HWq) lane-dense output, parity-major spatial ordering
    P, Cout, CK = w_ref.shape
    HWq = p_ref.shape[-1]

    # ConvTranspose2d as P small MXU matmuls (one per output-pixel parity); f32 accumulation.
    ys = [jnp.dot(w_ref[p], p_ref[0, p], preferred_element_type=jnp.float32)
          for p in range(P)]                                        # each (Cout, HWq) f32

    # InstanceNorm2d: per-(n, c) mean / biased variance over all spatial positions (all parities), f32.
    n_tot = float(P * HWq)
    total = ys[0].sum(axis=-1, keepdims=True)
    for p in range(1, P):
        total = total + ys[p].sum(axis=-1, keepdims=True)
    mean = total / n_tot                                            # (Cout, 1)
    ssq = ((ys[0] - mean) ** 2).sum(axis=-1, keepdims=True)
    for p in range(1, P):
        ssq = ssq + ((ys[p] - mean) ** 2).sum(axis=-1, keepdims=True)
    inv_std = lax.rsqrt(ssq / n_tot + EPS)                          # EUP rsqrt (free slot)

    # Normalize + LeakyReLU(0.2); lane offsets are multiples of HWq (>=128) -> aligned dense stores.
    for p in range(P):
        yn = (ys[p] - mean) * inv_std
        o_ref[0, :, pl.ds(p * HWq, HWq)] = jnp.where(yn >= 0, yn, NEG_SLOPE * yn).astype(o_ref.dtype)


def transpose_conv_block(x, weight, *, stride=2, padding=1, output_padding=0,
                         matmul_dtype=jnp.bfloat16):
    """x: (N, Cin, H, W) NCHW; weight: (Cin, Cout, K, K) (PyTorch ConvTranspose2d layout).
    Returns NCHW output matching TransposeConvBlock (bias=False since use_norm=True)."""
    N, Cin, H, W = x.shape
    _, Cout, K, _ = weight.shape
    s, pd, op = stride, padding, output_padding
    H_out = (H - 1) * s - 2 * pd + K + op
    W_out = (W - 1) * s - 2 * pd + K + op

    # Sub-pixel decomposition: y[c, s*q+a, s*q'+b] = sum_{ci,m,m'} x[ci, q+d_a-m, q'+d_b-m'] *
    #                                               w[ci, c, s*m+r_a, s*m'+r_b]
    # This drops the (1 - 1/s^2) exact-zero taps of the dilated-input formulation.
    # TODO(synk): general fallback when K % s != 0 or output_padding makes H_out % s != 0.
    assert K % s == 0 and H_out % s == 0 and W_out % s == 0, "unsupported geometry for fast path"
    M = K // s                        # taps per parity per axis
    HQ, WQ = H_out // s, W_out // s   # per-parity output grid
    d = [(a + pd) // s for a in range(s)]
    r = [(a + pd) % s for a in range(s)]

    # Pad the (undilated) input so every shifted window read is in range; pads read as zero.
    pad_lo = max(0, max(M - 1 - d[a] for a in range(s)))
    pad_hi_h = max(0, max(HQ - 1 + d[a] for a in range(s)) - (H - 1))
    pad_hi_w = max(0, max(WQ - 1 + d[b] for b in range(s)) - (W - 1))
    xq = x.astype(matmul_dtype)
    xp = jnp.pad(xq, ((0, 0), (0, 0), (pad_lo, pad_hi_h), (pad_lo, pad_hi_w)))

    # Per-parity patches, already transposed for a lane-dense matmul:
    #   patchesT[n, a*s+b, ci*M*M + m*M + m', q*WQ + q'] = x[n, ci, q + d_a - m, q' + d_b - m']
    par_blocks = []
    for a in range(s):
        for b in range(s):
            taps = []
            for m in range(M):
                for mp in range(M):
                    r0 = pad_lo + d[a] - m
                    c0 = pad_lo + d[b] - mp
                    taps.append(xp[:, :, r0:r0 + HQ, c0:c0 + WQ])
            blk = jnp.stack(taps, axis=2).reshape(N, Cin * M * M, HQ * WQ)
            par_blocks.append(blk)
    patchesT = jnp.stack(par_blocks, axis=1)                        # (N, s*s, Cin*M*M, HQ*WQ)

    # Per-parity weights: wmat[a*s+b, co, ci*M*M + m*M + m'] = w[ci, co, s*m + r_a, s*m' + r_b]
    wq = weight.astype(matmul_dtype)
    wmats = []
    for a in range(s):
        for b in range(s):
            sub = wq[:, :, r[a]::s, r[b]::s]                        # (Cin, Cout, M, M)
            wmats.append(jnp.transpose(sub, (1, 0, 2, 3)).reshape(Cout, Cin * M * M))
    wmat = jnp.stack(wmats, axis=0)                                 # (s*s, Cout, Cin*M*M)

    P = s * s
    CK = Cin * M * M
    HWq = HQ * WQ

    out = pl.pallas_call(
        _block_kernel,
        out_shape=jax.ShapeDtypeStruct((N, Cout, P * HWq), x.dtype),
        grid_spec=pltpu.PrefetchScalarGridSpec(
            num_scalar_prefetch=0,
            grid=(N,),
            in_specs=[
                pl.BlockSpec((1, P, CK, HWq), lambda n: (n, 0, 0, 0)),
                pl.BlockSpec((P, Cout, CK), lambda n: (0, 0, 0)),   # weights resident (constant block)
            ],
            out_specs=pl.BlockSpec((1, Cout, P * HWq), lambda n: (n, 0, 0)),
        ),
        compiler_params=pltpu.CompilerParams(
            dimension_semantics=("parallel",),        # batch steps split across v7x TensorCores
            vmem_limit_bytes=48 * 1024 * 1024,
        ),
    )(patchesT, wmat)

    # Pixel-shuffle the parity-major spatial axis back to interleaved NCHW (cheap, output-sized).
    out = out.reshape(N, Cout, s, s, HQ, WQ)
    out = out.transpose(0, 1, 4, 2, 5, 3).reshape(N, Cout, H_out, W_out)
    return out


def _reference(x, weight, *, stride=2, padding=1, output_padding=0):
    """Pure-JAX f32 reference of the PyTorch forward, for correctness checking."""
    Cin, Cout, K, _ = weight.shape
    w_conv = jnp.transpose(weight[:, :, ::-1, ::-1], (1, 0, 2, 3))  # (Cout, Cin, K, K)
    pad = K - 1 - padding
    y = lax.conv_general_dilated(
        x, w_conv, window_strides=(1, 1),
        padding=[(pad, pad + output_padding), (pad, pad + output_padding)],
        lhs_dilation=(stride, stride),
        dimension_numbers=("NCHW", "OIHW", "NCHW"))
    mean = y.mean(axis=(2, 3), keepdims=True)
    var = ((y - mean) ** 2).mean(axis=(2, 3), keepdims=True)
    yn = (y - mean) * lax.rsqrt(var + EPS)
    return jnp.where(yn > 0, yn, NEG_SLOPE * yn)


if __name__ == "__main__":
    key = jax.random.PRNGKey(0)
    kx, kw = jax.random.split(key)
    N, Cin, Cout, H, W, K = 2, 4, 8, 16, 16, 4
    x = jax.random.normal(kx, (N, Cin, H, W), jnp.float32)
    # deterministic ConvTranspose2d weight (shape (Cin, Cout, K, K)); no bias (use_norm=True)
    bound = 1.0 / (Cin * K * K) ** 0.5
    weight = jax.random.uniform(kw, (Cin, Cout, K, K), jnp.float32, -bound, bound)

    ref = _reference(x, weight)

    # Exactness check of the decomposition/norm/activation with an f32 matmul path.
    out_f32 = jax.block_until_ready(transpose_conv_block(x, weight, matmul_dtype=jnp.float32))
    assert out_f32.shape == (N, Cout, 2 * H, 2 * W), out_f32.shape
    assert jnp.allclose(out_f32, ref, atol=1e-4, rtol=1e-4), float(jnp.max(jnp.abs(out_f32 - ref)))

    # Default fast path: bf16 MXU inputs, f32 accumulation + f32 InstanceNorm math.
    out = jax.block_until_ready(transpose_conv_block(x, weight))
    assert out.shape == (N, Cout, 2 * H, 2 * W), out.shape
    assert jnp.allclose(out, ref, atol=5e-2, rtol=5e-2), float(jnp.max(jnp.abs(out - ref)))

    print("KERNEL_OK")
</pallas_src>

<mosaic_0001>
module attributes {stable_mosaic.version = 11 : i64} {
  func.func @_block_kernel(%arg0: i32, %arg1: memref<1x4x16x256xf32, #tpu.memory_space<vmem>>, %arg2: memref<4x8x16xf32, #tpu.memory_space<vmem>>, %arg3: memref<1x8x1024xf32, #tpu.memory_space<vmem>>) attributes {dimension_semantics = [#tpu.dimension_semantics<parallel>], iteration_bounds = array<i64: 2>, scalar_prefetch = 0 : i64, scratch_operands = 0 : i64, tpu.core_type = #tpu.core_type<tc>, window_params = [{transform_indices = @transform_0, window_bounds = array<i64: 1, 4, 16, 256>}, {pipeline_mode = #tpu.pipeline_mode<synchronous>, transform_indices = @transform_1, window_bounds = array<i64: 4, 8, 16>}, {transform_indices = @transform_2, window_bounds = array<i64: 1, 8, 1024>}]} {
    %c0 = arith.constant 0 : index
    %c0_0 = arith.constant 0 : index
    %c0_1 = arith.constant 0 : index
    %0 = vector.load %arg2[%c0, %c0_0, %c0_1] : memref<4x8x16xf32, #tpu.memory_space<vmem>>, vector<1x8x16xf32>
    %1 = vector.shape_cast %0 : vector<1x8x16xf32> to vector<8x16xf32>
    %c0_2 = arith.constant 0 : index
    %c0_3 = arith.constant 0 : index
    %c0_4 = arith.constant 0 : index
    %c0_5 = arith.constant 0 : index
    %2 = vector.load %arg1[%c0_2, %c0_3, %c0_4, %c0_5] : memref<1x4x16x256xf32, #tpu.memory_space<vmem>>, vector<1x1x16x256xf32>
    %3 = vector.shape_cast %2 : vector<1x1x16x256xf32> to vector<16x256xf32>
    %cst = arith.constant dense<0.000000e+00> : vector<8x256xf32>
    %4 = tpu.matmul %1, %3, %cst {dimension_numbers = #tpu.dot_dimension_numbers<[1], [0], [0], [1], [0, 0, 1, 1], [], []>} : vector<8x16xf32>, vector<16x256xf32>, vector<8x256xf32> -> vector<8x256xf32>
    %c1 = arith.constant 1 : index
    %c0_6 = arith.constant 0 : index
    %c0_7 = arith.constant 0 : index
    %5 = vector.load %arg2[%c1, %c0_6, %c0_7] : memref<4x8x16xf32, #tpu.memory_space<vmem>>, vector<1x8x16xf32>
    %6 = vector.shape_cast %5 : vector<1x8x16xf32> to vector<8x16xf32>
    %c0_8 = arith.constant 0 : index
    %c1_9 = arith.constant 1 : index
    %c0_10 = arith.constant 0 : index
    %c0_11 = arith.constant 0 : index
    %7 = vector.load %arg1[%c0_8, %c1_9, %c0_10, %c0_11] : memref<1x4x16x256xf32, #tpu.memory_space<vmem>>, vector<1x1x16x256xf32>
    %8 = vector.shape_cast %7 : vector<1x1x16x256xf32> to vector<16x256xf32>
    %cst_12 = arith.constant dense<0.000000e+00> : vector<8x256xf32>
    %9 = tpu.matmul %6, %8, %cst_12 {dimension_numbers = #tpu.dot_dimension_numbers<[1], [0], [0], [1], [0, 0, 1, 1], [], []>} : vector<8x16xf32>, vector<16x256xf32>, vector<8x256xf32> -> vector<8x256xf32>
    %c2 = arith.constant 2 : index
    %c0_13 = arith.constant 0 : index
    %c0_14 = arith.constant 0 : index
    %10 = vector.load %arg2[%c2, %c0_13, %c0_14] : memref<4x8x16xf32, #tpu.memory_space<vmem>>, vector<1x8x16xf32>
    %11 = vector.shape_cast %10 : vector<1x8x16xf32> to vector<8x16xf32>
    %c0_15 = arith.constant 0 : index
    %c2_16 = arith.constant 2 : index
    %c0_17 = arith.constant 0 : index
    %c0_18 = arith.constant 0 : index
    %12 = vector.load %arg1[%c0_15, %c2_16, %c0_17, %c0_18] : memref<1x4x16x256xf32, #tpu.memory_space<vmem>>, vector<1x1x16x256xf32>
    %13 = vector.shape_cast %12 : vector<1x1x16x256xf32> to vector<16x256xf32>
    %cst_19 = arith.constant dense<0.000000e+00> : vector<8x256xf32>
    %14 = tpu.matmul %11, %13, %cst_19 {dimension_numbers = #tpu.dot_dimension_numbers<[1], [0], [0], [1], [0, 0, 1, 1], [], []>} : vector<8x16xf32>, vector<16x256xf32>, vector<8x256xf32> -> vector<8x256xf32>
    %c3 = arith.constant 3 : index
    %c0_20 = arith.constant 0 : index
    %c0_21 = arith.constant 0 : index
    %15 = vector.load %arg2[%c3, %c0_20, %c0_21] : memref<4x8x16xf32, #tpu.memory_space<vmem>>, vector<1x8x16xf32>
    %16 = vector.shape_cast %15 : vector<1x8x16xf32> to vector<8x16xf32>
    %c0_22 = arith.constant 0 : index
    %c3_23 = arith.constant 3 : index
    %c0_24 = arith.constant 0 : index
    %c0_25 = arith.constant 0 : index
    %17 = vector.load %arg1[%c0_22, %c3_23, %c0_24, %c0_25] : memref<1x4x16x256xf32, #tpu.memory_space<vmem>>, vector<1x1x16x256xf32>
    %18 = vector.shape_cast %17 : vector<1x1x16x256xf32> to vector<16x256xf32>
    %cst_26 = arith.constant dense<0.000000e+00> : vector<8x256xf32>
    %19 = tpu.matmul %16, %18, %cst_26 {dimension_numbers = #tpu.dot_dimension_numbers<[1], [0], [0], [1], [0, 0, 1, 1], [], []>} : vector<8x16xf32>, vector<16x256xf32>, vector<8x256xf32> -> vector<8x256xf32>
    %cst_27 = arith.constant dense<0.000000e+00> : vector<8xf32>
    %20 = vector.multi_reduction <add>, %4, %cst_27 [1] : vector<8x256xf32> to vector<8xf32>
    %21 = vector.shape_cast %20 : vector<8xf32> to vector<8x1xf32>
    %cst_28 = arith.constant dense<0.000000e+00> : vector<8xf32>
    %22 = vector.multi_reduction <add>, %9, %cst_28 [1] : vector<8x256xf32> to vector<8xf32>
    %23 = vector.shape_cast %22 : vector<8xf32> to vector<8x1xf32>
    %24 = arith.addf %21, %23 : vector<8x1xf32>
    %cst_29 = arith.constant dense<0.000000e+00> : vector<8xf32>
    %25 = vector.multi_reduction <add>, %14, %cst_29 [1] : vector<8x256xf32> to vector<8xf32>
    %26 = vector.shape_cast %25 : vector<8xf32> to vector<8x1xf32>
    %27 = arith.addf %24, %26 : vector<8x1xf32>
    %cst_30 = arith.constant dense<0.000000e+00> : vector<8xf32>
    %28 = vector.multi_reduction <add>, %19, %cst_30 [1] : vector<8x256xf32> to vector<8xf32>
    %29 = vector.shape_cast %28 : vector<8xf32> to vector<8x1xf32>
    %30 = arith.addf %27, %29 : vector<8x1xf32>
    %cst_31 = arith.constant 1.024000e+03 : f32
    %31 = vector.broadcast %cst_31 : f32 to vector<8x1xf32>
    %32 = arith.divf %30, %31 : vector<8x1xf32>
    %33 = vector.broadcast %32 : vector<8x1xf32> to vector<8x256xf32>
    %34 = arith.subf %4, %33 : vector<8x256xf32>
    %35 = arith.mulf %34, %34 : vector<8x256xf32>
    %cst_32 = arith.constant dense<0.000000e+00> : vector<8xf32>
    %36 = vector.multi_reduction <add>, %35, %cst_32 [1] : vector<8x256xf32> to vector<8xf32>
    %37 = vector.shape_cast %36 : vector<8xf32> to vector<8x1xf32>
    %38 = vector.broadcast %32 : vector<8x1xf32> to vector<8x256xf32>
    %39 = arith.subf %9, %38 : vector<8x256xf32>
    %40 = arith.mulf %39, %39 : vector<8x256xf32>
    %cst_33 = arith.constant dense<0.000000e+00> : vector<8xf32>
    %41 = vector.multi_reduction <add>, %40, %cst_33 [1] : vector<8x256xf32> to vector<8xf32>
    %42 = vector.shape_cast %41 : vector<8xf32> to vector<8x1xf32>
    %43 = arith.addf %37, %42 : vector<8x1xf32>
    %44 = vector.broadcast %32 : vector<8x1xf32> to vector<8x256xf32>
    %45 = arith.subf %14, %44 : vector<8x256xf32>
    %46 = arith.mulf %45, %45 : vector<8x256xf32>
    %cst_34 = arith.constant dense<0.000000e+00> : vector<8xf32>
    %47 = vector.multi_reduction <add>, %46, %cst_34 [1] : vector<8x256xf32> to vector<8xf32>
    %48 = vector.shape_cast %47 : vector<8xf32> to vector<8x1xf32>
    %49 = arith.addf %43, %48 : vector<8x1xf32>
    %50 = vector.broadcast %32 : vector<8x1xf32> to vector<8x256xf32>
    %51 = arith.subf %19, %50 : vector<8x256xf32>
    %52 = arith.mulf %51, %51 : vector<8x256xf32>
    %cst_35 = arith.constant dense<0.000000e+00> : vector<8xf32>
    %53 = vector.multi_reduction <add>, %52, %cst_35 [1] : vector<8x256xf32> to vector<8xf32>
    %54 = vector.shape_cast %53 : vector<8xf32> to vector<8x1xf32>
    %55 = arith.addf %49, %54 : vector<8x1xf32>
    %cst_36 = arith.constant 1.024000e+03 : f32
    %56 = vector.broadcast %cst_36 : f32 to vector<8x1xf32>
    %57 = arith.divf %55, %56 : vector<8x1xf32>
    %cst_37 = arith.constant 9.99999974E-6 : f32
    %58 = vector.broadcast %cst_37 : f32 to vector<8x1xf32>
    %59 = arith.addf %57, %58 : vector<8x1xf32>
    %60 = math.rsqrt %59 : vector<8x1xf32>
    %61 = vector.broadcast %32 : vector<8x1xf32> to vector<8x256xf32>
    %62 = arith.subf %4, %61 : vector<8x256xf32>
    %63 = vector.broadcast %60 : vector<8x1xf32> to vector<8x256xf32>
    %64 = arith.mulf %62, %63 : vector<8x256xf32>
    %cst_38 = arith.constant 0.000000e+00 : f32
    %65 = vector.broadcast %cst_38 : f32 to vector<8x256xf32>
    %66 = arith.cmpf oge, %64, %65 : vector<8x256xf32>
    %cst_39 = arith.constant 2.000000e-01 : f32
    %67 = vector.broadcast %cst_39 : f32 to vector<8x256xf32>
    %68 = arith.mulf %67, %64 : vector<8x256xf32>
    %69 = arith.select %66, %64, %68 : vector<8x256xi1>, vector<8x256xf32>
    %c0_40 = arith.constant 0 : index
    %c0_41 = arith.constant 0 : index
    %c0_42 = arith.constant 0 : index
    %70 = vector.load %arg3[%c0_40, %c0_41, %c0_42] : memref<1x8x1024xf32, #tpu.memory_space<vmem>>, vector<1x8x256xf32>
    %71 = vector.shape_cast %70 : vector<1x8x256xf32> to vector<8x256xf32>
    %72 = vector.shape_cast %69 : vector<8x256xf32> to vector<1x8x256xf32>
    tpu.vector_store %arg3[%c0_40, %c0_41, %c0_42], %72 {strides = array<i32>} : memref<1x8x1024xf32, #tpu.memory_space<vmem>>, vector<1x8x256xf32>,
    %73 = vector.broadcast %32 : vector<8x1xf32> to vector<8x256xf32>
    %74 = arith.subf %9, %73 : vector<8x256xf32>
    %75 = vector.broadcast %60 : vector<8x1xf32> to vector<8x256xf32>
    %76 = arith.mulf %74, %75 : vector<8x256xf32>
    %cst_43 = arith.constant 0.000000e+00 : f32
    %77 = vector.broadcast %cst_43 : f32 to vector<8x256xf32>
    %78 = arith.cmpf oge, %76, %77 : vector<8x256xf32>
    %cst_44 = arith.constant 2.000000e-01 : f32
    %79 = vector.broadcast %cst_44 : f32 to vector<8x256xf32>
    %80 = arith.mulf %79, %76 : vector<8x256xf32>
    %81 = arith.select %78, %76, %80 : vector<8x256xi1>, vector<8x256xf32>
    %c0_45 = arith.constant 0 : index
    %c0_46 = arith.constant 0 : index
    %c256 = arith.constant 256 : index
    %82 = vector.load %arg3[%c0_45, %c0_46, %c256] : memref<1x8x1024xf32, #tpu.memory_space<vmem>>, vector<1x8x256xf32>
    %83 = vector.shape_cast %82 : vector<1x8x256xf32> to vector<8x256xf32>
    %84 = vector.shape_cast %81 : vector<8x256xf32> to vector<1x8x256xf32>
    tpu.vector_store %arg3[%c0_45, %c0_46, %c256], %84 {strides = array<i32>} : memref<1x8x1024xf32, #tpu.memory_space<vmem>>, vector<1x8x256xf32>,
    %85 = vector.broadcast %32 : vector<8x1xf32> to vector<8x256xf32>
    %86 = arith.subf %14, %85 : vector<8x256xf32>
    %87 = vector.broadcast %60 : vector<8x1xf32> to vector<8x256xf32>
    %88 = arith.mulf %86, %87 : vector<8x256xf32>
    %cst_47 = arith.constant 0.000000e+00 : f32
    %89 = vector.broadcast %cst_47 : f32 to vector<8x256xf32>
    %90 = arith.cmpf oge, %88, %89 : vector<8x256xf32>
    %cst_48 = arith.constant 2.000000e-01 : f32
    %91 = vector.broadcast %cst_48 : f32 to vector<8x256xf32>
    %92 = arith.mulf %91, %88 : vector<8x256xf32>
    %93 = arith.select %90, %88, %92 : vector<8x256xi1>, vector<8x256xf32>
    %c0_49 = arith.constant 0 : index
    %c0_50 = arith.constant 0 : index
    %c512 = arith.constant 512 : index
    %94 = vector.load %arg3[%c0_49, %c0_50, %c512] : memref<1x8x1024xf32, #tpu.memory_space<vmem>>, vector<1x8x256xf32>
    %95 = vector.shape_cast %94 : vector<1x8x256xf32> to vector<8x256xf32>
    %96 = vector.shape_cast %93 : vector<8x256xf32> to vector<1x8x256xf32>
    tpu.vector_store %arg3[%c0_49, %c0_50, %c512], %96 {strides = array<i32>} : memref<1x8x1024xf32, #tpu.memory_space<vmem>>, vector<1x8x256xf32>,
    %97 = vector.broadcast %32 : vector<8x1xf32> to vector<8x256xf32>
    %98 = arith.subf %19, %97 : vector<8x256xf32>
    %99 = vector.broadcast %60 : vector<8x1xf32> to vector<8x256xf32>
    %100 = arith.mulf %98, %99 : vector<8x256xf32>
    %cst_51 = arith.constant 0.000000e+00 : f32
    %101 = vector.broadcast %cst_51 : f32 to vector<8x256xf32>
    %102 = arith.cmpf oge, %100, %101 : vector<8x256xf32>
    %cst_52 = arith.constant 2.000000e-01 : f32
    %103 = vector.broadcast %cst_52 : f32 to vector<8x256xf32>
    %104 = arith.mulf %103, %100 : vector<8x256xf32>
    %105 = arith.select %102, %100, %104 : vector<8x256xi1>, vector<8x256xf32>
    %c0_53 = arith.constant 0 : index
    %c0_54 = arith.constant 0 : index
    %c768 = arith.constant 768 : index
    %106 = vector.load %arg3[%c0_53, %c0_54, %c768] : memref<1x8x1024xf32, #tpu.memory_space<vmem>>, vector<1x8x256xf32>
    %107 = vector.shape_cast %106 : vector<1x8x256xf32> to vector<8x256xf32>
    %108 = vector.shape_cast %105 : vector<8x256xf32> to vector<1x8x256xf32>
    tpu.vector_store %arg3[%c0_53, %c0_54, %c768], %108 {strides = array<i32>} : memref<1x8x1024xf32, #tpu.memory_space<vmem>>, vector<1x8x256xf32>,
    return
  }
  func.func @transform_0(%arg0: i32) -> (i32, i32, i32, i32) {
    %c0_i32 = arith.constant 0 : i32
    %c0_i32_0 = arith.constant 0 : i32
    %c0_i32_1 = arith.constant 0 : i32
    %c0_i32_2 = arith.constant 0 : i32
    return %arg0, %c0_i32, %c0_i32_0, %c0_i32_1 : i32, i32, i32, i32
  }
  func.func @transform_1(%arg0: i32) -> (i32, i32, i32) {
    %c0_i32 = arith.constant 0 : i32
    %c0_i32_0 = arith.constant 0 : i32
    %c0_i32_1 = arith.constant 0 : i32
    %c0_i32_2 = arith.constant 0 : i32
    return %c0_i32, %c0_i32_0, %c0_i32_1 : i32, i32, i32
  }
  func.func @transform_2(%arg0: i32) -> (i32, i32, i32) {
    %c0_i32 = arith.constant 0 : i32
    %c0_i32_0 = arith.constant 0 : i32
    %c0_i32_1 = arith.constant 0 : i32
    return %arg0, %c0_i32, %c0_i32_0 : i32, i32, i32
  }
}

</mosaic_0001>

<bundles_post_ra>
// kernel: tpu_custom_call.1
= control target key start
LH: loop header
LB: loop body
LE: loop exit
PB: predicated region body
PF: predicated region fallthrough
CT: control target
= control target key end

     0   :  { %7 = vsyncpa [#allocation3], 0  ;;  %s1177_s0 = inlined_call_operand.hbm [shape: f32[2,4,16,256], index: 0, kind: input, shape index: {}]   ;;  %s1178_s1 = inlined_call_operand.hbm [shape: f32[4,8,16], index: 1, kind: input, shape index: {}]   ;;  %s1179_s2 = inlined_call_operand.hbm [shape: f32[2,8,1024], index: 2, kind: output, shape index: {}]  }
   0x1   :  { %9 = vsyncpa [#allocation3 + $0x1], 0 }
   0x2   :  { %10 = vsyncpa [#allocation6], 0 }
   0x3   :  { %11 = vsyncpa [#allocation4], 0 }
   0x4   :  { %13 = vsyncpa [#allocation4 + $0x1], 0  ;;  %s953_s9 = smov 0   ;;  %s955_s10 = smov 0  }
   0x5   :  { %s957_s11 = smov 0   ;;  %s959_s12 = smov 0  }
   0x6 LB: > { %s974_s13 = sadd.s32 4294967295, %s928_s12   ;;  %s686_s14 = sadd.s32 4294967294, %s928_s12   ;;  %s928_s12 = sphi %s959_s12, %s1199_s12   ;;  %s924_s11 = sphi %s957_s11, %s1198_s11   ;;  %s920_s10 = sphi %s955_s10, %s1197_s10   ;;  %s916_s9 = sphi %s953_s9, %s1196_s9  }
   0x7   : > { %p39_p0 = scmp.ne.s32.totalorder %s920_s10, %s916_s9  ;;  %p1180_p1 = scmp.eq.s32.totalorder %s974_s13, 0 }
   0x8   : > { %p90_p3 = scmp.eq.s32.totalorder %s686_s14, 1  ;;  %p687_p5 = scmp.ge.s32.totalorder %s928_s12, 1 }
   0x9   : > { %p983_p4 = por %p1180_p1, %p39_p0  ;;  %p97_p7 = scmp.lt.s32.totalorder %s928_s12, 3 }
   0xa   : > { %p988_p6 = por %p90_p3, %p39_p0  ;;  %s930_s18 = smov [#allocation5]  }
   0xb   : > { %s1183_s15 = scalar_select %p983_p4, 1, 0 }
   0xc   : > { %s1184_s16 = scalar_select %p988_p6, 1, 0 }
   0xd   : > { %p993_p8 = pnand %p687_p5, %p97_p7  ;;  %s109_s19 = sshll.u32 %s930_s18, 4  ;;  %s997_s19 = int_to_ptr.vmem [resolvable:$true] %s109_s19 }
   0xe   : > { %s1009_s21 = sadd.s32 1, %s928_s12   ;;  %s26_s22 = sadd.s32 1, %s924_s11 }
   0xf   : > { %s1185_s17 = scalar_select %p993_p8, 1, 0 }
  0x10   : > { %p744_p9 = pneg %p993_p8  ;;  %s23_s23 = ssub.s32 %s928_s12, %s1009_s21 }
  0x11   : > { %s800_s26 = scalar_lea.hbm %s1178_s1, 512 }
  0x12   : > { %p1004_p11 = pnand %p744_p9, %p1180_p1  ;;  %p801_p12 = scmp.ne.s32.totalorder %s1178_s1, %s800_s26 }
  0x13   : > { %p807_p5 = scmp.lt.u32.totalorder %s800_s26, %s1178_s1 }
  0x14   : > { %p802_p13 = pneg %p1004_p11 }
  0x16   : > { %p803_p0 = pnand %p802_p13, %p801_p12 }
  0x18   : > { %p804_p3 = pneg %p803_p0 }
  0x1a   : > { %p809_p7 = pnand %p807_p5, %p804_p3 }
  0x1c   : > { %812 = shalt.err (!%p809_p7)
}
  0x1d   : > { %s813_s3 = scalar_lea.vmem %s997_s19, 512  ;;  %p821_p2 = scmp.lt.s32.totalorder %s997_s19, %s997_s19 }
  0x1e   : > { %p814_p9 = scmp.ne.s32.totalorder %s997_s19, %s813_s3  ;;  %p822_p6 = scmp.lt.s32.totalorder %s813_s3, %s813_s3 }
  0x20   : > { %p816_p10 = pnand %p814_p9, %p802_p13  ;;  %p823_p4 = por %p822_p6, %p821_p2 }
  0x22   : > { %p817_p1 = pneg %p816_p10 }
  0x24   : > { %p824_p8 = pnand %p823_p4, %p817_p1 }
  0x26   : > { %827 = shalt.err (!%p824_p8)
}
  0x27   : > { %s931_s4 = smov 128   ;;  %s932_s5 = smov 8  }
  0x28   : > { %747 = dma.hbm_to_vmem [thread:$0]  (!%p1004_p11), %s1178_s1, 512, %s997_s19, [#allocation6], %s931_s4, %s931_s4, %s932_s5  }
  0x29   : > { %p24_p2 = scmp.eq.s32.totalorder %s23_s23, 0  ;;  %p33_p1 = scmp.ne.s32.totalorder %s924_s11, %s920_s10 }
  0x2a   : > { %p34_p4 = scmp.eq.s32.totalorder %s928_s12, 0  ;;  %p757_p6 = scmp.lt.s32.totalorder %s928_s12, 2 }
  0x2b   : > { %s1040_s8 = scalar_select %p24_p2, %s924_s11, %s26_s22  }
  0x2c   : > { %p35_p8 = por %p34_p4, %p33_p1  ;;  %p1187_p10 = scmp.eq.s32.totalorder %s974_s13, 1 }
  0x2d   : > { %s123_s18 = sand.u32 1, %s924_s11   ;;  %s718_s24 = sshll.u32 %s928_s12, 11 }
  0x2e   : > { %p1044_p12 = por %p1187_p10, %p33_p1  ;;  %s690_s25 = sshll.u32 %s123_s18, 7 }
  0x2f   : > { %s1053_s27 = scalar_lea.hbm %s1177_s0, %s718_s24  ;;  %s127_s19 = scalar_lea.vmem [#allocation2], %s690_s25 }
  0x30   : > { %s134_s22 = sshll.u32 %s127_s19, 4  ;;  %p1055_p11 = pnand %p757_p6, %p35_p8  ;;  %s1059_s22 = int_to_ptr.vmem [resolvable:$true] %s134_s22 }
  0x31   : > { %s1061_s28 = scalar_lea.sflag [#allocation3], %s123_s18  ;;  %s828_s29 = scalar_lea.hbm %s1053_s27, 2048 }
  0x32   : > { %p829_p13 = scmp.ne.s32.totalorder %s1053_s27, %s828_s29  ;;  %p830_p0 = pneg %p1055_p11 }
  0x33   : > { %s833_s4 = scalar_lea.hbm %s1177_s0, 4096  ;;  %p834_p7 = scmp.lt.u32.totalorder %s1053_s27, %s1177_s0 }
  0x34   : > { %p831_p3 = pnand %p830_p0, %p829_p13  ;;  %p835_p9 = scmp.lt.u32.totalorder %s833_s4, %s828_s29 }
  0x35   : > { %p837_p1 = scmp.lt.u32.totalorder %s828_s29, %s1053_s27 }
  0x36   : > { %p832_p5 = pneg %p831_p3  ;;  %p836_p2 = por %p835_p9, %p834_p7 }
  0x38   : > { %p838_p4 = por %p837_p1, %p836_p2 }
  0x3a   : > { %p839_p6 = pnand %p838_p4, %p832_p5 }
  0x3c   : > { %842 = shalt.err (!%p839_p6)
}
  0x3d   : > { %s843_s7 = scalar_lea.vmem %s1059_s22, 2048  ;;  %s933_s18 = smov [#allocation2]  }
  0x3e   : > { %p844_p8 = scmp.ne.s32.totalorder %s1059_s22, %s843_s7  ;;  %s848_s24 = sshll.u32 %s933_s18, 4  ;;  %s849_s24 = int_to_ptr.vmem [resolvable:$false] %s848_s24 }
  0x3f   : > { %s850_s25 = scalar_lea.vmem %s849_s24, 4096  ;;  %p851_p3 = scmp.lt.s32.totalorder %s1059_s22, %s849_s24 }
  0x40   : > { %p846_p10 = pnand %p844_p8, %p830_p0  ;;  %p852_p7 = scmp.lt.s32.totalorder %s850_s25, %s843_s7 }
  0x42   : > { %p847_p13 = pneg %p846_p10  ;;  %p853_p9 = por %p852_p7, %p851_p3 }
  0x44   : > { %p854_p2 = pnand %p853_p9, %p847_p13 }
  0x46   : > { %857 = shalt.err (!%p854_p2)
}
  0x47   : > { %s934_s20 = smov 256   ;;  %s935_s26 = smov 16  }
  0x48   : > { %751 = dma.hbm_to_vmem [thread:$0]  (!%p1055_p11), %s1053_s27, 2048, %s1059_s22, %s1061_s28, %s934_s20, %s934_s20, %s935_s26  }
  0x49   : > { %p1190_p0 = scmp.ne.s32.totalorder %s1185_s17, 0 }
  0x4a   : > { %s1092_s19 = sand.u32 (!%p1190_p0), 1, %s920_s10   ;;  %p1191_p5 = scmp.ne.s32.totalorder (!%p1190_p0), %s1183_s15, 0 }
  0x4b   : > { %146 = sbr.rel (%p1190_p0) target bundleno = 657 (0x291), region = 28  ;;  %s694_s29 = sshll.u32 (!%p1190_p0), %s1092_s19, 7 }
  0x4c   : > { %s149_s30 = scalar_lea.sflag (!%p1190_p0), [#allocation3], %s1092_s19  ;;  %s1096_s3 = scalar_lea.vmem (!%p1190_p0), [#allocation2], %s694_s29 }
  0x52   : > { %903 = dma.done.wait (%p1191_p5), %s149_s30, 2048  }
  0x53   : > { %905 = vsyncadd (%p1191_p5), %s149_s30, 4294965248  ;;  %p1192_p11 = scmp.eq.s32.totalorder %s974_s13, 0 }
  0x55   : > { %907 = dma.done.wait (%p1192_p11), [#allocation6], 512   ;;  %p1193_p1 = pmov %p1192_p11 }
  0x56   : > { %v936_v0 = vmov 0.0   ;;  %v179_v1 = vld [vmem:[%s1096_s3 + $0x8] sm:$0xff]  ;;  %v181_v2 = vld [vmem:[%s1096_s3 + $0x18] sm:$0xff]  ;;  %v178_v3 = vld [vmem:[%s1096_s3] sm:$0xff]  ;;  %vm182_vm0 = vcmask 130048   ;;  %s696_s15 = sshll.u32 %s1092_s19, 6 }
  0x57   : > { %909 = vsyncadd (%p1193_p1), [#allocation6], 4294966784  ;;  %250 = vmatprep.mubr.f32.mxu0 %v936_v0  ;;  %331 = vmatprep.mubr.f32.mxu1 %v936_v0  ;;  %v720_v4 = vpack.c.bf16 %v181_v2, %v179_v1  ;;  %v180_v5 = vld [vmem:[%s1096_s3 + $0x10] sm:$0xff]  ;;  %v699_v6 = vld [vmem:[%s1096_s3 + $0x28] sm:$0xff]  ;;  %s719_s17 = sshll.u32 %s974_s13, 10  ;;  %s176_s27 = scalar_lea.vmem [#allocation7], %s696_s15 }
  0x58   : > { %v722_v7 = vpack.c.bf16 %v180_v5, %v178_v3  ;;  %v701_v8 = vld [vmem:[%s1096_s3 + $0x38] sm:$0xff]  ;;  %v704_v9 = vld [vmem:[%s1096_s3 + $0x48] sm:$0xff]  ;;  %v698_v13 = vld [vmem:[%s1096_s3 + $0x20] sm:$0xff]  ;;  %s606_s22 = sshll.u32 %s176_s27, 4  ;;  %s1133_s28 = scalar_lea.hbm %s1179_s2, %s719_s17  ;;  %s1135_s22 = int_to_ptr.vmem [resolvable:$true] %s606_s22 }
  0x59   : > { %v706_v10 = vld [vmem:[%s1096_s3 + $0x58] sm:$0xff]  ;;  %721 = vmatprep.subr.bf16.mxu0 %v720_v4  ;;  %v724_v11 = vpack.c.bf16 %v701_v8, %v699_v6  ;;  %v700_v14 = vld [vmem:[%s1096_s3 + $0x30] sm:$0xff]  ;;  %v703_v15 = vld [vmem:[%s1096_s3 + $0x40] sm:$0xff]  ;;  %s592_s4 = scalar_lea.sflag [#allocation4], %s1092_s19  ;;  %s858_s5 = scalar_lea.vmem %s1135_s22, 1024 }
  0x5a   : > { %v728_v12 = vpack.c.bf16 %v706_v10, %v704_v9  ;;  %723 = vmatpush1.bf16.msra.mxu0 %v722_v7  ;;  %v177_v16 = vld [vmem:[#allocation5] sm:$0xff]  ;;  %v726_v17 = vpack.c.bf16 %v700_v14, %v698_v13  ;;  %v705_v18 = vld [vmem:[%s1096_s3 + $0x50] sm:$0xff]  ;;  %v709_v20 = vld [vmem:[%s1096_s3 + $0x68] sm:$0xff]  ;;  %p859_p4 = scmp.ne.s32.totalorder %s1135_s22, %s858_s5  ;;  %s937_s6 = smov [#allocation7]  }
  0x5b   : > { %725 = vmatprep.subr.bf16.mxu1 %v724_v11  ;;  %v730_v19 = vpack.c.bf16 %v705_v18, %v703_v15  ;;  %v711_v21 = vld [vmem:[%s1096_s3 + $0x78] sm:$0xff]  ;;  %v708_v22 = vld [vmem:[%s1096_s3 + $0x60] sm:$0xff]  ;;  %v258_v23 = vld [vmem:[#allocation5 + $0x8] sm:$0xff]  ;;  %s862_s7 = sshll.u32 %s937_s6, 4  ;;  %s863_s7 = int_to_ptr.vmem [resolvable:$false] %s862_s7 }
  0x5c   : > { %729 = vmatprep.subr.bf16.mxu0 %v728_v12  ;;  %727 = vmatpush1.bf16.msra.mxu1 %v726_v17  ;;  %v732_v24 = vpack.c.bf16 %v711_v21, %v709_v20  ;;  %v710_v25 = vld [vmem:[%s1096_s3 + $0x70] sm:$0xff]  ;;  %v420_v28 = vld [vmem:[#allocation5 + $0x18] sm:$0xff]  ;;  %p860_p6 = pnand %p859_p4, %p1044_p12  ;;  %s864_s18 = scalar_lea.vmem %s863_s7, 2048 }
  0x5d   : > { %697 = vmatmul.mubr.msk.f32.vlgmr.msra.gmra.mrb[0].mxu0 %vm182_vm0, %v177_v16  ;;  %v734_v26 = vpack.c.bf16 %v710_v25, %v708_v22  ;;  %v339_v27 = vld [vmem:[#allocation5 + $0x10] sm:$0xff]  ;;  %p865_p10 = scmp.lt.s32.totalorder %s1135_s22, %s863_s7  ;;  %p866_p13 = scmp.lt.s32.totalorder %s864_s18, %s858_s5 }
  0x5e   : > { %731 = vmatpush1.bf16.msra.mxu0 %v730_v19  ;;  %412 = vmatprep.mubr.f32.mxu0 %v936_v0  ;;  %p861_p8 = pneg %p860_p6 }
  0x5f   : > { %702 = vmatmul.mubr.msk.f32.vlgmr.msra.gmra.mrb[0].mxu1 %vm182_vm0, %v258_v23  ;;  %733 = vmatprep.subr.bf16.mxu1 %v732_v24  ;;  %p867_p3 = por %p866_p13, %p865_p10 }
  0x60   : > { %735 = vmatpush1.bf16.msra.mxu1 %v734_v26  ;;  %493 = vmatprep.mubr.f32.mxu1 %v936_v0 }
  0x61   : > { %707 = vmatmul.mubr.msk.f32.vlgmr.msra.gmra.mrb[2].mxu0 %vm182_vm0, %v339_v27  ;;  %p868_p7 = pnand %p867_p3, %p861_p8 }
  0x63   : > { %712 = vmatmul.mubr.msk.f32.vlgmr.msra.gmra.mrb[2].mxu1 %vm182_vm0, %v420_v28 }
 0x130   : > { %v252_v29 = vpop.f32.mrb[0].mxu0 }
 0x131   : > { %v254_v30 = vpop.f32.mrb[1].mxu0 }
 0x132   : > { %v333_v31 = vpop.f32.mrb[0].mxu1  ;;  %v500_v32 = vadd.f32 %v254_v30, %v252_v29 }
 0x133   : > { %v335_v33 = vpop.f32.mrb[1].mxu1 }
 0x134   : > { %501 = vadd.xlane.f32.xlu0 %v500_v32  ;;  %v414_v34 = vpop.f32.mrb[2].mxu0  ;;  %v503_v35 = vadd.f32 %v335_v33, %v333_v31 }
 0x135   : > { %v416_v36 = vpop.f32.mrb[3].mxu0 }
 0x136   : > { %v495_v37 = vpop.f32.mrb[2].mxu1  ;;  %v507_v38 = vadd.f32 %v416_v36, %v414_v34 }
 0x137   : > { %v497_v39 = vpop.f32.mrb[3].mxu1 }
 0x138   : > { %504 = vadd.xlane.f32.xlu0 %v503_v35  ;;  %508 = vadd.xlane.f32.xlu1 %v507_v38  ;;  %v511_v40 = vadd.f32 %v497_v39, %v495_v37 }
 0x13c   : > { %512 = vadd.xlane.f32.xlu1 %v511_v40 }
 0x1c1   : > { %v502_v41 = vpop.xlane.xlu0 %501 }
 0x1c5   : > { %v505_v42 = vpop.xlane.xlu0 %504  ;;  %v509_v43 = vpop.xlane.xlu1 %508 }
 0x1c6   : > { %v506_v44 = vadd.f32 %v505_v42, %v502_v41 }
 0x1c8   : > { %v510_v45 = vadd.f32 %v509_v43, %v506_v44 }
 0x1c9   : > { %v513_v46 = vpop.xlane.xlu1 %512 }
 0x1ca   : > { %v514_v47 = vadd.f32 %v513_v46, %v510_v45 }
 0x1cc   : > { %v516_v48 = vmul.f32 0.0009765625, %v514_v47 }
 0x1ce   : > { %v524_v49 = vsub.f32 %v333_v31, %v516_v48  ;;  %v525_v50 = vsub.f32 %v335_v33, %v516_v48  ;;  %v517_v51 = vsub.f32 %v252_v29, %v516_v48  ;;  %v518_v52 = vsub.f32 %v254_v30, %v516_v48 }
 0x1cf   : > { %v540_v53 = vsub.f32 %v495_v37, %v516_v48  ;;  %v541_v54 = vsub.f32 %v497_v39, %v516_v48  ;;  %v532_v55 = vsub.f32 %v414_v34, %v516_v48  ;;  %v533_v56 = vsub.f32 %v416_v36, %v516_v48 }
 0x1d0   : > { %v526_v57 = vmul.f32 %v524_v49, %v524_v49  ;;  %v527_v58 = vmul.f32 %v525_v50, %v525_v50  ;;  %v519_v59 = vmul.f32 %v517_v51, %v517_v51  ;;  %v520_v60 = vmul.f32 %v518_v52, %v518_v52 }
 0x1d1   : > { %v542_v61 = vmul.f32 %v540_v53, %v540_v53  ;;  %v543_v62 = vmul.f32 %v541_v54, %v541_v54  ;;  %v534_v1 = vmul.f32 %v532_v55, %v532_v55  ;;  %v535_v2 = vmul.f32 %v533_v56, %v533_v56 }
 0x1d2   : > { %v528_v63 = vadd.f32 %v527_v58, %v526_v57  ;;  %v521_v0 = vadd.f32 %v520_v60, %v519_v59 }
 0x1d3   : > { %v544_v3 = vadd.f32 %v543_v62, %v542_v61  ;;  %v536_v4 = vadd.f32 %v535_v2, %v534_v1 }
 0x1d4   : > { %529 = vadd.xlane.f32.xlu1 %v528_v63  ;;  %522 = vadd.xlane.f32.xlu0 %v521_v0 }
 0x1d8   : > { %545 = vadd.xlane.f32.xlu1 %v544_v3  ;;  %537 = vadd.xlane.f32.xlu0 %v536_v4 }
 0x261   : > { %v530_v5 = vpop.xlane.xlu1 %529  ;;  %v523_v6 = vpop.xlane.xlu0 %522 }
 0x262   : > { %v531_v7 = vadd.f32 %v530_v5, %v523_v6 }
 0x265   : > { %v538_v8 = vpop.xlane.xlu0 %537  ;;  %v546_v10 = vpop.xlane.xlu1 %545 }
 0x266   : > { %v539_v9 = vadd.f32 %v538_v8, %v531_v7 }
 0x268   : > { %v547_v11 = vadd.f32 %v546_v10, %v539_v9 }
 0x26a   : > { %v548_v12 = vmul.f32 0.0009765625, %v547_v11 }
 0x26c   : > { %v549_v13 = vadd.f32 1e-05, %v548_v12 }
 0x26e   : > { %798 = vrsqrt.f32 %v549_v13 }
 0x278   : > { %v799_v14 = vpop.eup %798 }
 0x279   : > { %v551_v15 = vmul.f32 %v799_v14, %v517_v51  ;;  %v552_v16 = vmul.f32 %v799_v14, %v518_v52  ;;  %v561_v17 = vmul.f32 %v799_v14, %v524_v49  ;;  %v562_v18 = vmul.f32 %v799_v14, %v525_v50 }
 0x27a   : > { %v571_v19 = vmul.f32 %v799_v14, %v532_v55  ;;  %v572_v20 = vmul.f32 %v799_v14, %v533_v56  ;;  %v581_v21 = vmul.f32 %v799_v14, %v540_v53  ;;  %v582_v22 = vmul.f32 %v799_v14, %v541_v54 }
 0x27b   : > { %vm553_vm1 = vcmp.ge.f32.partialorder %v551_v15, 0.0  ;;  %vm554_vm2 = vcmp.ge.f32.partialorder %v552_v16, 0.0  ;;  %v555_v23 = vmul.f32 0.2, %v551_v15  ;;  %v556_v24 = vmul.f32 0.2, %v552_v16 }
 0x27c   : > { %vm563_vm3 = vcmp.ge.f32.partialorder %v561_v17, 0.0  ;;  %vm564_vm4 = vcmp.ge.f32.partialorder %v562_v18, 0.0  ;;  %v565_v25 = vmul.f32 0.2, %v561_v17  ;;  %v566_v26 = vmul.f32 0.2, %v562_v18 }
 0x27d   : > { %v557_v27 = vsel %vm553_vm1, %v551_v15, %v555_v23  ;;  %v558_v28 = vsel %vm554_vm2, %v552_v16, %v556_v24  ;;  %vm573_vm5 = vcmp.ge.f32.partialorder %v571_v19, 0.0  ;;  %vm574_vm6 = vcmp.ge.f32.partialorder %v572_v20, 0.0 }
 0x27e   : > { %559 = vst [vmem:[%s176_s27] sm:$0xff] %v557_v27  ;;  %560 = vst [vmem:[%s176_s27 + $0x8] sm:$0xff] %v558_v28  ;;  %v567_v29 = vsel %vm563_vm3, %v561_v17, %v565_v25  ;;  %v568_v30 = vsel %vm564_vm4, %v562_v18, %v566_v26  ;;  %v575_v31 = vmul.f32 0.2, %v571_v19  ;;  %v576_v32 = vmul.f32 0.2, %v572_v20 }
 0x27f   : > { %569 = vst [vmem:[%s176_s27 + $0x10] sm:$0xff] %v567_v29  ;;  %570 = vst [vmem:[%s176_s27 + $0x18] sm:$0xff] %v568_v30  ;;  %vm583_vm7 = vcmp.ge.f32.partialorder %v581_v21, 0.0  ;;  %vm584_vm8 = vcmp.ge.f32.partialorder %v582_v22, 0.0  ;;  %v585_v33 = vmul.f32 0.2, %v581_v21 }
 0x280   : > { %v586_v34 = vmul.f32 0.2, %v582_v22  ;;  %v577_v35 = vsel %vm573_vm5, %v571_v19, %v575_v31  ;;  %v578_v36 = vsel %vm574_vm6, %v572_v20, %v576_v32 }
 0x281   : > { %579 = vst [vmem:[%s176_s27 + $0x20] sm:$0xff] %v577_v35  ;;  %580 = vst [vmem:[%s176_s27 + $0x28] sm:$0xff] %v578_v36  ;;  %v587_v37 = vsel %vm583_vm7, %v581_v21, %v585_v33 }
 0x282   : > { %v588_v38 = vsel %vm584_vm8, %v582_v22, %v586_v34  ;;  %589 = vst [vmem:[%s176_s27 + $0x30] sm:$0xff] %v587_v37 }
 0x283   : > { %590 = vst [vmem:[%s176_s27 + $0x38] sm:$0xff] %v588_v38 }
 0x284   : > { %871 = shalt.err (!%p868_p7)
}
 0x285   : > { %s872_s24 = scalar_lea.hbm %s1133_s28, 1024  ;;  %s876_s26 = scalar_lea.hbm %s1179_s2, 2048 }
 0x286   : > { %p873_p9 = scmp.ne.s32.totalorder %s1133_s28, %s872_s24  ;;  %p877_p5 = scmp.lt.u32.totalorder %s1133_s28, %s1179_s2 }
 0x287   : > { %p878_p11 = scmp.lt.u32.totalorder %s876_s26, %s872_s24  ;;  %p880_p4 = scmp.lt.u32.totalorder %s872_s24, %s1133_s28 }
 0x288   : > { %p874_p2 = pnand %p873_p9, %p1044_p12 }
 0x289   : > { %p879_p1 = por %p878_p11, %p877_p5 }
 0x28a   : > { %p875_p0 = pneg %p874_p2 }
 0x28b   : > { %p881_p6 = por %p880_p4, %p879_p1 }
 0x28d   : > { %p882_p8 = pnand %p881_p6, %p875_p0 }
 0x28f   : > { %885 = shalt.err (!%p882_p8)
}
 0x290   : > { %742 = dma.vmem_to_hbm [thread:$0]  (%p1044_p12), %s1135_s22, 1024, %s1133_s28, %s592_s4  }
 0x291 PF: > { %s618_s30 = sand.u32 1, %s916_s9   ;;  %p1194_p10 = scmp.ne.s32.totalorder %s1184_s16, 0 }
 0x292   : > { %p1195_p13 = scmp.ge.s32.totalorder %s928_s12, 2  ;;  %s619_s3 = scalar_lea.sflag [#allocation4], %s618_s30 }
 0x294   : > { %p753_p3 = pnand %p1195_p13, %p1194_p10 }
 0x296   : > { %911 = dma.done.wait (!%p753_p3), %s619_s3, 1024  }
 0x297   : > { %913 = vsyncadd (!%p753_p3), %s619_s3, 4294966272  ;;  %p16_p7 = scmp.ge.s32.totalorder %s1009_s21, 4   ;;  %s1196_s9 = smov %s920_s10 }
 0x298   : > { %s1197_s10 = smov %s924_s11  ;;  %s1198_s11 = smov %s1040_s8 }
 0x299   : > { %s1199_s12 = smov %s1009_s21  ;;  %18 = sbr.rel (!%p16_p7) target bundleno = 6 (0x6), region = 83 }
 0x2a0   :  { %624 = vsyncpa [#allocation3], 1 }
 0x2a1   :  { %626 = vsyncpa [#allocation3 + $0x1], 1 }
 0x2a2   :  { %627 = vsyncpa [#allocation6], 1 }
 0x2a3   :  { %628 = vsyncpa [#allocation4], 1 }
 0x2a4   :  { %630 = vsyncpa [#allocation4 + $0x1], 1 }

</bundles_post_ra>
